<compile_context>
chip_gen: v7x
topology: tpu7x:2x2x1
jax: 0.10.0
libtpu: 0.0.40
codegen_flags: <defaults>
</compile_context>

<pallas_src>
import jax
import jax.numpy as jnp
from jax.experimental import pallas as pl
from jax.experimental.pallas import tpu as pltpu


def _make_kernel(n_cout: int, tc_out: int):
    def kernel(x_ref, w_ref, b_ref, o_ref):
        # x_ref: (C, t_s)   w_ref: (tc_out, C)   b_ref: (tc_out, 1) f32   o_ref: (tc_out, t_s)
        x = x_ref[...]                                                   # native dtype
        y = jnp.dot(w_ref[...], x, preferred_element_type=jnp.float32)  # 1x1 conv on the MXU
        y = y + b_ref[...]                                               # bias, broadcast over lanes
        if n_cout == 1:
            res = x                                                      # residual = whole block
        else:
            c = pl.program_id(0)                                         # C_out tile index (outermost axis)
            row0 = pl.multiple_of(c * tc_out, tc_out)                    # sublane-aligned start
            res = x_ref[pl.ds(row0, tc_out), :]                          # residual rows for this tile
        y = y + res                                                      # residual add in the f32 accumulator
        o_ref[...] = y.astype(o_ref.dtype)                               # single cast at the store
    return kernel


def _vmem_capacity_bytes() -> int:
    """Physical VMEM per TensorCore; conservative (v7x) fallback if unqueryable."""
    try:
        info = pltpu.get_tpu_info()
        cap = int(getattr(info, "vmem_capacity_bytes", 0) or 0)
        if cap > 0:
            return cap
    except Exception:
        pass
    return 64 << 20


def _pick_cout_tile(C: int, itemsize: int, budget_bytes: int) -> int:
    """Largest C_out tile (divisor of C, multiple of 8) whose weight slab fits the budget."""
    if C * C * itemsize <= budget_bytes:
        return C
    for tc in (2048, 1024, 512, 256, 128, 64, 32, 16, 8):
        if tc < C and C % tc == 0 and tc * C * itemsize <= budget_bytes:
            return tc
    return C


def _pallas_residual_call(x3, w, b2, *, t_s, tc_out, n_cout, vmem_limit, donate_x, use_buffered):
    N_eff, C, S_eff = x3.shape
    grid = (n_cout, N_eff, pl.cdiv(S_eff, t_s))
    const_kw = {"pipeline_mode": pl.Buffered(1)} if use_buffered else {}

    in_specs = [
        # x: batch dim squeezed; block = (C, t_s), spatial lane-dense; re-read per C_out tile only.
        pl.BlockSpec((None, C, t_s), lambda c, n, j: (n, 0, j)),
        # weight: (tc_out, C); index constant in (n, j) -> resident across all batch/spatial steps.
        pl.BlockSpec((tc_out, C), lambda c, n, j: (c, 0), **const_kw),
        # bias: (tc_out, 1) f32, broadcast over lanes in-kernel.
        pl.BlockSpec((tc_out, 1), lambda c, n, j: (c, 0), **const_kw),
    ]
    out_specs = pl.BlockSpec((None, tc_out, t_s), lambda c, n, j: (n, c, j))

    return pl.pallas_call(
        _make_kernel(n_cout, tc_out),
        out_shape=jax.ShapeDtypeStruct((N_eff, C, S_eff), x3.dtype),
        grid_spec=pltpu.PrefetchScalarGridSpec(
            num_scalar_prefetch=0,
            grid=grid,
            in_specs=in_specs,
            out_specs=out_specs,
        ),
        compiler_params=pltpu.CompilerParams(
            # C_out axis sequential (weight residency); (batch, spatial) megacore-shardable.
            dimension_semantics=("arbitrary", "parallel", "parallel"),
            vmem_limit_bytes=vmem_limit,
        ),
        input_output_aliases=({0: 0} if donate_x else {}),
    )(x3, w, b2)


def residual_add_1x1conv(x_nchw, w, b, *, target_block_bytes=None, donate_x=False):
    """Fused `Conv2d(C, C, 1)(x) + x`, NCHW in / NCHW out.

    x_nchw: (N, C, H, W)
    w:      (C_out, C_in)   == torch_weight[:, :, 0, 0]  (used directly, no transpose)
    b:      (C_out,)
    """
    N, C, H, W = x_nchw.shape
    S = H * W
    itemsize = jnp.dtype(x_nchw.dtype).itemsize
    vmem_cap = _vmem_capacity_bytes()

    # Generation-aware block-byte target: bigger blocks on 128 MiB VMEM parts (v5e/v6e),
    # smaller on v7x's 64 MiB.
    if target_block_bytes is None:
        target_block_bytes = (4 << 20) if vmem_cap >= (96 << 20) else (2 << 20)

    x3 = x_nchw.reshape(N, C, S)  # free reshape: NCHW is already (N, C, S) contiguous

    # Small-spatial fallback: fold batch into the lane axis so stores stay >=128-dense.
    fold_batch = (S < 128) and (N > 1)
    if fold_batch:
        x_call = jnp.transpose(x3, (1, 0, 2)).reshape(1, C, N * S)  # one-time layout plumbing
        N_eff, S_eff = 1, N * S
    else:
        x_call = x3
        N_eff, S_eff = N, S

    # C_out tiling: keep the resident weight slab within ~VMEM/16 so weight +
    # double-buffered activation blocks fit comfortably even on v7x's 64 MiB.
    tc_out = _pick_cout_tile(C, itemsize, max(vmem_cap // 16, 1 << 20))
    n_cout = C // tc_out

    # Spatial (lane) tile: byte target per x block, floored at 512 lanes for wide
    # unmasked vector stores, multiple of 128, capped at the full extent.
    t_s = (target_block_bytes // max(C * itemsize, 1)) // 128 * 128
    t_s = max(t_s, 512)
    if S_eff <= t_s:
        t_s = S_eff  # full-extent block is always legal

    # VMEM limit from the actual footprint (2x buffered x/out + resident weight/bias),
    # with headroom, capped below physical VMEM.
    x_blk = C * t_s * itemsize
    o_blk = tc_out * t_s * itemsize
    w_blk = tc_out * C * itemsize
    need = 2 * (x_blk + o_blk) + w_blk + tc_out * 4
    vmem_limit = int(min(vmem_cap * 3 // 4, max(32 << 20, 2 * need)))

    b2 = b.reshape(C, 1).astype(jnp.float32)

    try:
        out3 = _pallas_residual_call(
            x_call, w, b2, t_s=t_s, tc_out=tc_out, n_cout=n_cout,
            vmem_limit=vmem_limit, donate_x=donate_x, use_buffered=True)
    except Exception:
        # pipeline_mode=pl.Buffered(1) unsupported on this build -> default buffering.
        out3 = _pallas_residual_call(
            x_call, w, b2, t_s=t_s, tc_out=tc_out, n_cout=n_cout,
            vmem_limit=vmem_limit, donate_x=donate_x, use_buffered=False)

    if fold_batch:
        return jnp.transpose(out3.reshape(C, N, S), (1, 0, 2)).reshape(N, C, H, W)
    return out3.reshape(N, C, H, W)


if __name__ == "__main__":
    key = jax.random.PRNGKey(0)
    kx, kw, kb = jax.random.split(key, 3)

    N, C, H, W = 2, 4, 16, 16
    x = jax.random.normal(kx, (N, C, H, W), dtype=jnp.float32)

    # Deterministic "Conv2d(C, C, 1)" parameters. PyTorch weight shape is
    # (C_out, C_in, 1, 1); it is used directly as (C_out, C_in).
    w_torch = jax.random.normal(kw, (C, C, 1, 1), dtype=jnp.float32) * 0.1
    b = jax.random.normal(kb, (C,), dtype=jnp.float32) * 0.1
    w = w_torch[:, :, 0, 0]  # (C_out, C_in)

    out = jax.block_until_ready(residual_add_1x1conv(x, w, b))

    # Pure-JAX reference of ResidualAdd.forward (block = 1x1 conv, shortcut=None).
    ref = jnp.einsum("oi,nihw->nohw", w, x) + b[None, :, None, None] + x
    assert out.shape == (N, C, H, W)
    assert jnp.allclose(out, ref, atol=1e-5, rtol=1e-5)

    print("KERNEL_OK")
</pallas_src>

<mosaic_0001>
module attributes {stable_mosaic.version = 11 : i64} {
  func.func @kernel(%arg0: i32, %arg1: i32, %arg2: i32, %arg3: memref<1x4x256xf32, #tpu.memory_space<vmem>>, %arg4: memref<4x4xf32, #tpu.memory_space<vmem>>, %arg5: memref<4x1xf32, #tpu.memory_space<vmem>>, %arg6: memref<1x4x256xf32, #tpu.memory_space<vmem>>) attributes {dimension_semantics = [#tpu.dimension_semantics<arbitrary>, #tpu.dimension_semantics<parallel>, #tpu.dimension_semantics<parallel>], iteration_bounds = array<i64: 1, 2, 1>, scalar_prefetch = 0 : i64, scratch_operands = 0 : i64, tpu.core_type = #tpu.core_type<tc>, window_params = [{transform_indices = @transform_0, window_bounds = array<i64: 1, 4, 256>}, {pipeline_mode = #tpu.pipeline_mode<synchronous>, transform_indices = @transform_1, window_bounds = array<i64: 4, 4>}, {pipeline_mode = #tpu.pipeline_mode<synchronous>, transform_indices = @transform_2, window_bounds = array<i64: 4, 1>}, {transform_indices = @transform_3, window_bounds = array<i64: 1, 4, 256>}]} {
    %c0 = arith.constant 0 : index
    %c0_0 = arith.constant 0 : index
    %c0_1 = arith.constant 0 : index
    %0 = vector.load %arg3[%c0, %c0_0, %c0_1] : memref<1x4x256xf32, #tpu.memory_space<vmem>>, vector<1x4x256xf32>
    %1 = vector.shape_cast %0 : vector<1x4x256xf32> to vector<4x256xf32>
    %c0_2 = arith.constant 0 : index
    %c0_3 = arith.constant 0 : index
    %2 = vector.load %arg4[%c0_2, %c0_3] : memref<4x4xf32, #tpu.memory_space<vmem>>, vector<4x4xf32>
    %cst = arith.constant dense<0.000000e+00> : vector<4x256xf32>
    %3 = tpu.matmul %2, %1, %cst {dimension_numbers = #tpu.dot_dimension_numbers<[1], [0], [0], [1], [0, 0, 1, 1], [], []>} : vector<4x4xf32>, vector<4x256xf32>, vector<4x256xf32> -> vector<4x256xf32>
    %c0_4 = arith.constant 0 : index
    %c0_5 = arith.constant 0 : index
    %4 = vector.load %arg5[%c0_4, %c0_5] : memref<4x1xf32, #tpu.memory_space<vmem>>, vector<4x1xf32>
    %5 = vector.broadcast %4 : vector<4x1xf32> to vector<4x256xf32>
    %6 = arith.addf %3, %5 : vector<4x256xf32>
    %7 = arith.addf %6, %1 : vector<4x256xf32>
    %c0_6 = arith.constant 0 : index
    %c0_7 = arith.constant 0 : index
    %c0_8 = arith.constant 0 : index
    %8 = vector.load %arg6[%c0_6, %c0_7, %c0_8] : memref<1x4x256xf32, #tpu.memory_space<vmem>>, vector<1x4x256xf32>
    %9 = vector.shape_cast %8 : vector<1x4x256xf32> to vector<4x256xf32>
    %10 = vector.shape_cast %7 : vector<4x256xf32> to vector<1x4x256xf32>
    tpu.vector_store %arg6[%c0_6, %c0_7, %c0_8], %10 {strides = array<i32>} : memref<1x4x256xf32, #tpu.memory_space<vmem>>, vector<1x4x256xf32>,
    return
  }
  func.func @transform_0(%arg0: i32, %arg1: i32, %arg2: i32) -> (i32, i32, i32) {
    %c0_i32 = arith.constant 0 : i32
    %c0_i32_0 = arith.constant 0 : i32
    return %arg1, %c0_i32, %arg2 : i32, i32, i32
  }
  func.func @transform_1(%arg0: i32, %arg1: i32, %arg2: i32) -> (i32, i32) {
    %c0_i32 = arith.constant 0 : i32
    %c0_i32_0 = arith.constant 0 : i32
    return %arg0, %c0_i32 : i32, i32
  }
  func.func @transform_2(%arg0: i32, %arg1: i32, %arg2: i32) -> (i32, i32) {
    %c0_i32 = arith.constant 0 : i32
    %c0_i32_0 = arith.constant 0 : i32
    return %arg0, %c0_i32 : i32, i32
  }
  func.func @transform_3(%arg0: i32, %arg1: i32, %arg2: i32) -> (i32, i32, i32) {
    %c0_i32 = arith.constant 0 : i32
    return %arg1, %arg0, %arg2 : i32, i32, i32
  }
}

module attributes {stable_mosaic.version = 11 : i64} {
  func.func @kernel(%arg0: i32, %arg1: i32, %arg2: i32, %arg3: memref<1x4x256xf32, #tpu.memory_space<vmem>>, %arg4: memref<4x4xf32, #tpu.memory_space<vmem>>, %arg5: memref<4x1xf32, #tpu.memory_space<vmem>>, %arg6: memref<1x4x256xf32, #tpu.memory_space<vmem>>) attributes {dimension_semantics = [#tpu.dimension_semantics<arbitrary>, #tpu.dimension_semantics<parallel>, #tpu.dimension_semantics<parallel>], iteration_bounds = array<i64: 1, 2, 1>, scalar_prefetch = 0 : i64, scratch_operands = 0 : i64, tpu.core_type = #tpu.core_type<tc>, window_params = [{transform_indices = @transform_0, window_bounds = array<i64: 1, 4, 256>}, {transform_indices = @transform_1, window_bounds = array<i64: 4, 4>}, {transform_indices = @transform_2, window_bounds = array<i64: 4, 1>}, {transform_indices = @transform_3, window_bounds = array<i64: 1, 4, 256>}]} {
    %c0 = arith.constant 0 : index
    %c0_0 = arith.constant 0 : index
    %c0_1 = arith.constant 0 : index
    %0 = vector.load %arg3[%c0, %c0_0, %c0_1] : memref<1x4x256xf32, #tpu.memory_space<vmem>>, vector<1x4x256xf32>
    %1 = vector.shape_cast %0 : vector<1x4x256xf32> to vector<4x256xf32>
    %c0_2 = arith.constant 0 : index
    %c0_3 = arith.constant 0 : index
    %2 = vector.load %arg4[%c0_2, %c0_3] : memref<4x4xf32, #tpu.memory_space<vmem>>, vector<4x4xf32>
    %cst = arith.constant dense<0.000000e+00> : vector<4x256xf32>
    %3 = tpu.matmul %2, %1, %cst {dimension_numbers = #tpu.dot_dimension_numbers<[1], [0], [0], [1], [0, 0, 1, 1], [], []>} : vector<4x4xf32>, vector<4x256xf32>, vector<4x256xf32> -> vector<4x256xf32>
    %c0_4 = arith.constant 0 : index
    %c0_5 = arith.constant 0 : index
    %4 = vector.load %arg5[%c0_4, %c0_5] : memref<4x1xf32, #tpu.memory_space<vmem>>, vector<4x1xf32>
    %5 = vector.broadcast %4 : vector<4x1xf32> to vector<4x256xf32>
    %6 = arith.addf %3, %5 : vector<4x256xf32>
    %7 = arith.addf %6, %1 : vector<4x256xf32>
    %c0_6 = arith.constant 0 : index
    %c0_7 = arith.constant 0 : index
    %c0_8 = arith.constant 0 : index
    %8 = vector.load %arg6[%c0_6, %c0_7, %c0_8] : memref<1x4x256xf32, #tpu.memory_space<vmem>>, vector<1x4x256xf32>
    %9 = vector.shape_cast %8 : vector<1x4x256xf32> to vector<4x256xf32>
    %10 = vector.shape_cast %7 : vector<4x256xf32> to vector<1x4x256xf32>
    tpu.vector_store %arg6[%c0_6, %c0_7, %c0_8], %10 {strides = array<i32>} : memref<1x4x256xf32, #tpu.memory_space<vmem>>, vector<1x4x256xf32>,
    return
  }
  func.func @transform_0(%arg0: i32, %arg1: i32, %arg2: i32) -> (i32, i32, i32) {
    %c0_i32 = arith.constant 0 : i32
    %c0_i32_0 = arith.constant 0 : i32
    return %arg1, %c0_i32, %arg2 : i32, i32, i32
  }
  func.func @transform_1(%arg0: i32, %arg1: i32, %arg2: i32) -> (i32, i32) {
    %c0_i32 = arith.constant 0 : i32
    %c0_i32_0 = arith.constant 0 : i32
    return %arg0, %c0_i32 : i32, i32
  }
  func.func @transform_2(%arg0: i32, %arg1: i32, %arg2: i32) -> (i32, i32) {
    %c0_i32 = arith.constant 0 : i32
    %c0_i32_0 = arith.constant 0 : i32
    return %arg0, %c0_i32 : i32, i32
  }
  func.func @transform_3(%arg0: i32, %arg1: i32, %arg2: i32) -> (i32, i32, i32) {
    %c0_i32 = arith.constant 0 : i32
    return %arg1, %arg0, %arg2 : i32, i32, i32
  }
}

</mosaic_0001>

<bundles_post_ra>
// kernel: tpu_custom_call.1
= control target key start
LH: loop header
LB: loop body
LE: loop exit
PB: predicated region body
PF: predicated region fallthrough
CT: control target
= control target key end

     0   :  { %8 = vsyncpa [#allocation3], 0  ;;  %s890_s0 = inlined_call_operand.hbm [shape: f32[2,4,256], index: 0, kind: input, shape index: {}]   ;;  %s891_s1 = inlined_call_operand.vmem [shape: f32[4,4], index: 1, kind: input, shape index: {}]   ;;  %s892_s2 = inlined_call_operand.vmem [shape: f32[4,1], index: 2, kind: input, shape index: {}]   ;;  %s893_s3 = inlined_call_operand.hbm [shape: f32[2,4,256], index: 3, kind: output, shape index: {}]  }
   0x1   :  { %10 = vsyncpa [#allocation3 + $0x1], 0 }
   0x2   :  { %11 = vsyncpa [#allocation4], 0 }
   0x3   :  { %13 = vsyncpa [#allocation4 + $0x1], 0  ;;  %s712_s12 = smov 0   ;;  %s714_s13 = smov 0  }
   0x4   :  { %s716_s14 = smov 0   ;;  %s718_s15 = smov 0  }
   0x5   :  { %s720_s16 = smov 0   ;;  %s722_s17 = smov 0  }
   0x6 LB: > { %s486_s18 = sadd.s32 4294967295, %s686_s17   ;;  %s487_s19 = sadd.s32 4294967294, %s686_s17   ;;  %s686_s17 = sphi %s722_s17, %s19_s17   ;;  %s682_s16 = sphi %s720_s16, %s909_s16   ;;  %s678_s15 = sphi %s718_s15, %s908_s15   ;;  %s674_s14 = sphi %s716_s14, %s907_s14   ;;  %s670_s13 = sphi %s714_s13, %s906_s13   ;;  %s666_s12 = sphi %s712_s12, %s905_s12  }
   0x7   : > { %s34_s20 = sadd.s32 1, %s682_s16  ;;  %s47_s21 = sadd.s32 1, %s674_s14 }
   0x8   : > { %p36_p0 = scmp.ge.s32.totalorder %s34_s20, 2  ;;  %p54_p1 = scmp.ne.s32.totalorder %s674_s14, %s670_s13 }
   0x9   : > { %p55_p2 = scmp.eq.s32.totalorder %s686_s17, 0  ;;  %p60_p3 = scmp.ne.s32.totalorder %s670_s13, %s666_s12 }
   0xa   : > { %s911_s20 = smov (%p36_p0, %s34_s20), 0  ;;  %p61_p5 = scmp.eq.s32.totalorder %s486_s18, 0 }
   0xb   : > { %p753_p4 = por %p55_p2, %p54_p1  ;;  %s42_s23 = ssub.s32 %s682_s16, %s911_s20 }
   0xc   : > { %p140_p6 = scmp.eq.s32.totalorder %s486_s18, 1  ;;  %p45_p7 = scmp.eq.s32.totalorder %s42_s23, 0 }
   0xd   : > { %p759_p8 = por %p61_p5, %p60_p3  ;;  %p146_p10 = scmp.eq.s32.totalorder %s487_s19, 1 }
   0xe   : > { %p763_p9 = por %p140_p6, %p54_p1  ;;  %p520_p13 = scmp.lt.s32.totalorder %s686_s17, 2 }
   0xf   : > { %s768_s26 = scalar_select %p45_p7, %s674_s14, %s47_s21  }
  0x10   : > { %s897_s25 = scalar_select %p763_p9, 1, 0 }
  0x11   : > { %p770_p11 = por %p146_p10, %p60_p3  ;;  %s180_s28 = sand.u32 1, %s674_s14  }
  0x12   : > { %s492_s29 = sshll.u32 %s180_s28, 3  ;;  %s506_s30 = sshll.u32 %s682_s16, 7 }
  0x13   : > { %s898_s27 = scalar_select %p770_p11, 1, 0 }
  0x14   : > { %s781_s6 = scalar_lea.hbm %s890_s0, %s506_s30  ;;  %s184_s7 = scalar_lea.vmem [#allocation2], %s492_s29 }
  0x15   : > { %s194_s8 = sshll.u32 %s184_s7, 4  ;;  %p787_p0 = pnand %p520_p13, %p753_p4  ;;  %s783_s8 = int_to_ptr.vmem [resolvable:$true] %s194_s8 }
  0x16   : > { %s181_s10 = scalar_lea.sflag [#allocation3], %s180_s28  ;;  %s574_s11 = scalar_lea.hbm %s781_s6, 128 }
  0x17   : > { %p575_p3 = scmp.ne.s32.totalorder %s781_s6, %s574_s11  ;;  %p576_p5 = pneg %p787_p0 }
  0x18   : > { %s579_s21 = scalar_lea.hbm %s890_s0, 256  ;;  %p580_p4 = scmp.lt.u32.totalorder %s781_s6, %s890_s0 }
  0x19   : > { %p577_p6 = pnand %p576_p5, %p575_p3  ;;  %p581_p10 = scmp.lt.u32.totalorder %s579_s21, %s574_s11 }
  0x1a   : > { %p583_p12 = scmp.lt.u32.totalorder %s574_s11, %s781_s6 }
  0x1b   : > { %p578_p7 = pneg %p577_p6  ;;  %p582_p13 = por %p581_p10, %p580_p4 }
  0x1d   : > { %p584_p1 = por %p583_p12, %p582_p13 }
  0x1f   : > { %p585_p2 = pnand %p584_p1, %p578_p7 }
  0x21   : > { %588 = shalt.err (!%p585_p2)
}
  0x22   : > { %s589_s28 = scalar_lea.vmem %s783_s8, 128  ;;  %s688_s29 = smov [#allocation2]  }
  0x23   : > { %p590_p3 = scmp.ne.s32.totalorder %s783_s8, %s589_s28  ;;  %s594_s30 = sshll.u32 %s688_s29, 4  ;;  %s595_s30 = int_to_ptr.vmem [resolvable:$false] %s594_s30 }
  0x24   : > { %s596_s4 = scalar_lea.vmem %s595_s30, 256  ;;  %p597_p9 = scmp.lt.s32.totalorder %s783_s8, %s595_s30 }
  0x25   : > { %p592_p6 = pnand %p590_p3, %p576_p5  ;;  %p598_p4 = scmp.lt.s32.totalorder %s596_s4, %s589_s28 }
  0x27   : > { %p593_p11 = pneg %p592_p6  ;;  %p599_p10 = por %p598_p4, %p597_p9 }
  0x29   : > { %p600_p12 = pnand %p599_p10, %p593_p11 }
  0x2b   : > { %603 = shalt.err (!%p600_p12)
}
  0x2c   : > { %515 = dma.hbm_to_vmem [thread:$0]  (!%p787_p0), %s781_s6, 128, %s783_s8, %s181_s10  }
  0x2d   : > { %p900_p1 = scmp.lt.s32.totalorder %s686_s17, 3  ;;  %p901_p2 = scmp.ge.s32.totalorder %s686_s17, 1 }
  0x2f   : > { %p200_p5 = pnand %p901_p2, %p900_p1 }
  0x30   : > { %s823_s5 = sand.u32 (!%p200_p5), 1, %s670_s13  }
  0x31   : > { %203 = sbr.rel (%p200_p5) target bundleno = 295 (0x127), region = 32  ;;  %s496_s7 = sshll.u32 (!%p200_p5), %s823_s5, 3 }
  0x32   : > { %s206_s11 = scalar_lea.sflag (!%p200_p5), [#allocation3], %s823_s5  ;;  %s209_s18 = scalar_lea.vmem (!%p200_p5), [#allocation2], %s496_s7 }
  0x38   : > { %657 = dma.done.wait (%p759_p8), %s206_s11, 128  }
  0x39   : > { %659 = vsyncadd (%p759_p8), %s206_s11, 4294967168  ;;  %v689_v0 = vmov 0.0   ;;  %v690_v1 = vmov 0   ;;  %v250_v2 = vld [vmem:[%s209_s18] sm:$0xff]  ;;  %vm264_vm0 = vcmask 1043456   ;;  %vm260_vm1 = vcmask 31744  }
  0x3a   : > { %333 = vmatprep.mubr.f32.mxu0 %v689_v0  ;;  %572 = vset.pattern.permute.xlu0 %v690_v1  ;;  %v252_v3 = vld [vmem:[%s892_s2] sm:$0xf]  ;;  %v259_v4 = vcombine.high %v250_v2, %v250_v2  ;;  %s507_s24 = sshll.u32 %s678_s15, 7  ;;  %s239_s19 = scalar_lea.vmem [#allocation5], %s496_s7 }
  0x3b   : > { %255 = vperm.xlu0 %572, %v252_v3   ;;  %v251_v5 = vld [vmem:[%s891_s1] sm:$0xf]  ;;  %s367_s21 = sshll.u32 %s239_s19, 4  ;;  %s841_s28 = scalar_lea.hbm %s893_s3, %s507_s24  ;;  %s843_s21 = int_to_ptr.vmem [resolvable:$true] %s367_s21 }
  0x3c   : > { %498 = vmatprep.subr.msk.mxu0 %vm264_vm0, %v259_v4  ;;  %s349_s29 = scalar_lea.sflag [#allocation4], %s823_s5  ;;  %s604_s30 = scalar_lea.vmem %s843_s21, 128 }
  0x3d   : > { %499 = vmatpush1.msk.msra.mxu0 %vm264_vm0, %v250_v2  ;;  %p605_p8 = scmp.ne.s32.totalorder %s843_s21, %s604_s30  ;;  %p902_p9 = scmp.ne.s32.totalorder %s897_s25, 0 }
  0x3e   : > { %500 = vmatmul.mubr.msk.f32.vlgmr.msra.gmra.mrb[0].mxu0 %vm260_vm1, %v251_v5  ;;  %s691_s15 = smov [#allocation5]  }
  0x3f   : > { %p606_p11 = pnand %p605_p8, %p902_p9  ;;  %s608_s4 = sshll.u32 %s691_s15, 4  ;;  %s609_s4 = int_to_ptr.vmem [resolvable:$false] %s608_s4 }
  0x40   : > { %s610_s7 = scalar_lea.vmem %s609_s4, 256  ;;  %p611_p7 = scmp.lt.s32.totalorder %s843_s21, %s609_s4 }
  0x41   : > { %p607_p0 = pneg %p606_p11  ;;  %p612_p13 = scmp.lt.s32.totalorder %s610_s7, %s604_s30 }
  0x43   : > { %p613_p3 = por %p612_p13, %p611_p7 }
  0x45   : > { %p614_p6 = pnand %p613_p3, %p607_p0 }
  0xba   : > { %v256_v6 = vpop.permute.xlu0 %255 }
 0x111   : > { %v335_v7 = vpop.f32.mrb[0].mxu0 }
 0x112   : > { %v336_v8 = vadd.f32 %v335_v7, %v256_v6  ;;  %v337_v9 = vpop.f32.mrb[1].mxu0 }
 0x113   : > { %v338_v10 = vadd.f32 %v337_v9, %v256_v6 }
 0x114   : > { %v341_v11 = vadd.f32 %v336_v8, %v250_v2 }
 0x115   : > { %v342_v12 = vadd.f32 %v338_v10, %v259_v4 }
 0x117   : > { %v345_v13 = vcombine.low %v341_v11, %v342_v12 }
 0x119   : > { %347 = vst [vmem:[%s239_s19] sm:$0xff] %v345_v13 }
 0x11a   : > { %617 = shalt.err (!%p614_p6)
}
 0x11b   : > { %s618_s5 = scalar_lea.hbm %s841_s28, 128  ;;  %s622_s6 = scalar_lea.hbm %s893_s3, 256 }
 0x11c   : > { %p619_p4 = scmp.ne.s32.totalorder %s841_s28, %s618_s5  ;;  %p623_p1 = scmp.lt.u32.totalorder %s841_s28, %s893_s3 }
 0x11d   : > { %p624_p2 = scmp.lt.u32.totalorder %s622_s6, %s618_s5  ;;  %p626_p8 = scmp.lt.u32.totalorder %s618_s5, %s841_s28 }
 0x11e   : > { %p620_p10 = pnand %p619_p4, %p902_p9 }
 0x11f   : > { %p625_p5 = por %p624_p2, %p623_p1 }
 0x120   : > { %p621_p12 = pneg %p620_p10 }
 0x121   : > { %p627_p11 = por %p626_p8, %p625_p5 }
 0x123   : > { %p628_p0 = pnand %p627_p11, %p621_p12 }
 0x125   : > { %631 = shalt.err (!%p628_p0)
}
 0x126   : > { %510 = dma.vmem_to_hbm [thread:$0]  (%p902_p9), %s843_s21, 128, %s841_s28, %s349_s29  }
 0x127 PF: > { %s379_s10 = sand.u32 1, %s666_s12   ;;  %p903_p7 = scmp.ne.s32.totalorder %s898_s27, 0 }
 0x128   : > { %p904_p13 = scmp.ge.s32.totalorder %s686_s17, 2  ;;  %s380_s24 = scalar_lea.sflag [#allocation4], %s379_s10 }
 0x12a   : > { %p517_p3 = pnand %p904_p13, %p903_p7 }
 0x12c   : > { %661 = dma.done.wait (!%p517_p3), %s380_s24, 128  }
 0x12d   : > { %663 = vsyncadd (!%p517_p3), %s380_s24, 4294967168  ;;  %s19_s17 = sadd.s32 1, %s686_s17   ;;  %s905_s12 = smov %s670_s13 }
 0x12e   : > { %p16_p6 = scmp.ge.s32.totalorder %s19_s17, 4   ;;  %s906_s13 = smov %s674_s14 }
 0x12f   : > { %s907_s14 = smov %s768_s26  ;;  %s908_s15 = smov %s682_s16 }
 0x130   : > { %s909_s16 = smov %s911_s20  ;;  %18 = sbr.rel (!%p16_p6) target bundleno = 6 (0x6), region = 83 }
 0x137   :  { %385 = vsyncpa [#allocation3], 1 }
 0x138   :  { %387 = vsyncpa [#allocation3 + $0x1], 1 }
 0x139   :  { %388 = vsyncpa [#allocation4], 1 }
 0x13a   :  { %390 = vsyncpa [#allocation4 + $0x1], 1 }

// kernel: tpu_custom_call.1
= control target key start
LH: loop header
LB: loop body
LE: loop exit
PB: predicated region body
PF: predicated region fallthrough
CT: control target
= control target key end

     0   :  { %8 = vsyncpa [#allocation3], 0  ;;  %s890_s0 = inlined_call_operand.hbm [shape: f32[2,4,256], index: 0, kind: input, shape index: {}]   ;;  %s891_s1 = inlined_call_operand.vmem [shape: f32[4,4], index: 1, kind: input, shape index: {}]   ;;  %s892_s2 = inlined_call_operand.vmem [shape: f32[4,1], index: 2, kind: input, shape index: {}]   ;;  %s893_s3 = inlined_call_operand.hbm [shape: f32[2,4,256], index: 3, kind: output, shape index: {}]  }
   0x1   :  { %10 = vsyncpa [#allocation3 + $0x1], 0 }
   0x2   :  { %11 = vsyncpa [#allocation4], 0 }
   0x3   :  { %13 = vsyncpa [#allocation4 + $0x1], 0  ;;  %s712_s12 = smov 0   ;;  %s714_s13 = smov 0  }
   0x4   :  { %s716_s14 = smov 0   ;;  %s718_s15 = smov 0  }
   0x5   :  { %s720_s16 = smov 0   ;;  %s722_s17 = smov 0  }
   0x6 LB: > { %s486_s18 = sadd.s32 4294967295, %s686_s17   ;;  %s487_s19 = sadd.s32 4294967294, %s686_s17   ;;  %s686_s17 = sphi %s722_s17, %s19_s17   ;;  %s682_s16 = sphi %s720_s16, %s909_s16   ;;  %s678_s15 = sphi %s718_s15, %s908_s15   ;;  %s674_s14 = sphi %s716_s14, %s907_s14   ;;  %s670_s13 = sphi %s714_s13, %s906_s13   ;;  %s666_s12 = sphi %s712_s12, %s905_s12  }
   0x7   : > { %s34_s20 = sadd.s32 1, %s682_s16  ;;  %s47_s21 = sadd.s32 1, %s674_s14 }
   0x8   : > { %p36_p0 = scmp.ge.s32.totalorder %s34_s20, 2  ;;  %p54_p1 = scmp.ne.s32.totalorder %s674_s14, %s670_s13 }
   0x9   : > { %p55_p2 = scmp.eq.s32.totalorder %s686_s17, 0  ;;  %p60_p3 = scmp.ne.s32.totalorder %s670_s13, %s666_s12 }
   0xa   : > { %s911_s20 = smov (%p36_p0, %s34_s20), 0  ;;  %p61_p5 = scmp.eq.s32.totalorder %s486_s18, 0 }
   0xb   : > { %p753_p4 = por %p55_p2, %p54_p1  ;;  %s42_s23 = ssub.s32 %s682_s16, %s911_s20 }
   0xc   : > { %p140_p6 = scmp.eq.s32.totalorder %s486_s18, 1  ;;  %p45_p7 = scmp.eq.s32.totalorder %s42_s23, 0 }
   0xd   : > { %p759_p8 = por %p61_p5, %p60_p3  ;;  %p146_p10 = scmp.eq.s32.totalorder %s487_s19, 1 }
   0xe   : > { %p763_p9 = por %p140_p6, %p54_p1  ;;  %p520_p13 = scmp.lt.s32.totalorder %s686_s17, 2 }
   0xf   : > { %s768_s26 = scalar_select %p45_p7, %s674_s14, %s47_s21  }
  0x10   : > { %s897_s25 = scalar_select %p763_p9, 1, 0 }
  0x11   : > { %p770_p11 = por %p146_p10, %p60_p3  ;;  %s180_s28 = sand.u32 1, %s674_s14  }
  0x12   : > { %s492_s29 = sshll.u32 %s180_s28, 3  ;;  %s506_s30 = sshll.u32 %s682_s16, 7 }
  0x13   : > { %s898_s27 = scalar_select %p770_p11, 1, 0 }
  0x14   : > { %s781_s6 = scalar_lea.hbm %s890_s0, %s506_s30  ;;  %s184_s7 = scalar_lea.vmem [#allocation2], %s492_s29 }
  0x15   : > { %s194_s8 = sshll.u32 %s184_s7, 4  ;;  %p787_p0 = pnand %p520_p13, %p753_p4  ;;  %s783_s8 = int_to_ptr.vmem [resolvable:$true] %s194_s8 }
  0x16   : > { %s181_s10 = scalar_lea.sflag [#allocation3], %s180_s28  ;;  %s574_s11 = scalar_lea.hbm %s781_s6, 128 }
  0x17   : > { %p575_p3 = scmp.ne.s32.totalorder %s781_s6, %s574_s11  ;;  %p576_p5 = pneg %p787_p0 }
  0x18   : > { %s579_s21 = scalar_lea.hbm %s890_s0, 256  ;;  %p580_p4 = scmp.lt.u32.totalorder %s781_s6, %s890_s0 }
  0x19   : > { %p577_p6 = pnand %p576_p5, %p575_p3  ;;  %p581_p10 = scmp.lt.u32.totalorder %s579_s21, %s574_s11 }
  0x1a   : > { %p583_p12 = scmp.lt.u32.totalorder %s574_s11, %s781_s6 }
  0x1b   : > { %p578_p7 = pneg %p577_p6  ;;  %p582_p13 = por %p581_p10, %p580_p4 }
  0x1d   : > { %p584_p1 = por %p583_p12, %p582_p13 }
  0x1f   : > { %p585_p2 = pnand %p584_p1, %p578_p7 }
  0x21   : > { %588 = shalt.err (!%p585_p2)
}
  0x22   : > { %s589_s28 = scalar_lea.vmem %s783_s8, 128  ;;  %s688_s29 = smov [#allocation2]  }
  0x23   : > { %p590_p3 = scmp.ne.s32.totalorder %s783_s8, %s589_s28  ;;  %s594_s30 = sshll.u32 %s688_s29, 4  ;;  %s595_s30 = int_to_ptr.vmem [resolvable:$false] %s594_s30 }
  0x24   : > { %s596_s4 = scalar_lea.vmem %s595_s30, 256  ;;  %p597_p9 = scmp.lt.s32.totalorder %s783_s8, %s595_s30 }
  0x25   : > { %p592_p6 = pnand %p590_p3, %p576_p5  ;;  %p598_p4 = scmp.lt.s32.totalorder %s596_s4, %s589_s28 }
  0x27   : > { %p593_p11 = pneg %p592_p6  ;;  %p599_p10 = por %p598_p4, %p597_p9 }
  0x29   : > { %p600_p12 = pnand %p599_p10, %p593_p11 }
  0x2b   : > { %603 = shalt.err (!%p600_p12)
}
  0x2c   : > { %515 = dma.hbm_to_vmem [thread:$0]  (!%p787_p0), %s781_s6, 128, %s783_s8, %s181_s10  }
  0x2d   : > { %p900_p1 = scmp.lt.s32.totalorder %s686_s17, 3  ;;  %p901_p2 = scmp.ge.s32.totalorder %s686_s17, 1 }
  0x2f   : > { %p200_p5 = pnand %p901_p2, %p900_p1 }
  0x30   : > { %s823_s5 = sand.u32 (!%p200_p5), 1, %s670_s13  }
  0x31   : > { %203 = sbr.rel (%p200_p5) target bundleno = 295 (0x127), region = 32  ;;  %s496_s7 = sshll.u32 (!%p200_p5), %s823_s5, 3 }
  0x32   : > { %s206_s11 = scalar_lea.sflag (!%p200_p5), [#allocation3], %s823_s5  ;;  %s209_s18 = scalar_lea.vmem (!%p200_p5), [#allocation2], %s496_s7 }
  0x38   : > { %657 = dma.done.wait (%p759_p8), %s206_s11, 128  }
  0x39   : > { %659 = vsyncadd (%p759_p8), %s206_s11, 4294967168  ;;  %v689_v0 = vmov 0.0   ;;  %v690_v1 = vmov 0   ;;  %v250_v2 = vld [vmem:[%s209_s18] sm:$0xff]  ;;  %vm264_vm0 = vcmask 1043456   ;;  %vm260_vm1 = vcmask 31744  }
  0x3a   : > { %333 = vmatprep.mubr.f32.mxu0 %v689_v0  ;;  %572 = vset.pattern.permute.xlu0 %v690_v1  ;;  %v252_v3 = vld [vmem:[%s892_s2] sm:$0xf]  ;;  %v259_v4 = vcombine.high %v250_v2, %v250_v2  ;;  %s507_s24 = sshll.u32 %s678_s15, 7  ;;  %s239_s19 = scalar_lea.vmem [#allocation5], %s496_s7 }
  0x3b   : > { %255 = vperm.xlu0 %572, %v252_v3   ;;  %v251_v5 = vld [vmem:[%s891_s1] sm:$0xf]  ;;  %s367_s21 = sshll.u32 %s239_s19, 4  ;;  %s841_s28 = scalar_lea.hbm %s893_s3, %s507_s24  ;;  %s843_s21 = int_to_ptr.vmem [resolvable:$true] %s367_s21 }
  0x3c   : > { %498 = vmatprep.subr.msk.mxu0 %vm264_vm0, %v259_v4  ;;  %s349_s29 = scalar_lea.sflag [#allocation4], %s823_s5  ;;  %s604_s30 = scalar_lea.vmem %s843_s21, 128 }
  0x3d   : > { %499 = vmatpush1.msk.msra.mxu0 %vm264_vm0, %v250_v2  ;;  %p605_p8 = scmp.ne.s32.totalorder %s843_s21, %s604_s30  ;;  %p902_p9 = scmp.ne.s32.totalorder %s897_s25, 0 }
  0x3e   : > { %500 = vmatmul.mubr.msk.f32.vlgmr.msra.gmra.mrb[0].mxu0 %vm260_vm1, %v251_v5  ;;  %s691_s15 = smov [#allocation5]  }
  0x3f   : > { %p606_p11 = pnand %p605_p8, %p902_p9  ;;  %s608_s4 = sshll.u32 %s691_s15, 4  ;;  %s609_s4 = int_to_ptr.vmem [resolvable:$false] %s608_s4 }
  0x40   : > { %s610_s7 = scalar_lea.vmem %s609_s4, 256  ;;  %p611_p7 = scmp.lt.s32.totalorder %s843_s21, %s609_s4 }
  0x41   : > { %p607_p0 = pneg %p606_p11  ;;  %p612_p13 = scmp.lt.s32.totalorder %s610_s7, %s604_s30 }
  0x43   : > { %p613_p3 = por %p612_p13, %p611_p7 }
  0x45   : > { %p614_p6 = pnand %p613_p3, %p607_p0 }
  0xba   : > { %v256_v6 = vpop.permute.xlu0 %255 }
 0x111   : > { %v335_v7 = vpop.f32.mrb[0].mxu0 }
 0x112   : > { %v336_v8 = vadd.f32 %v335_v7, %v256_v6  ;;  %v337_v9 = vpop.f32.mrb[1].mxu0 }
 0x113   : > { %v338_v10 = vadd.f32 %v337_v9, %v256_v6 }
 0x114   : > { %v341_v11 = vadd.f32 %v336_v8, %v250_v2 }
 0x115   : > { %v342_v12 = vadd.f32 %v338_v10, %v259_v4 }
 0x117   : > { %v345_v13 = vcombine.low %v341_v11, %v342_v12 }
 0x119   : > { %347 = vst [vmem:[%s239_s19] sm:$0xff] %v345_v13 }
 0x11a   : > { %617 = shalt.err (!%p614_p6)
}
 0x11b   : > { %s618_s5 = scalar_lea.hbm %s841_s28, 128  ;;  %s622_s6 = scalar_lea.hbm %s893_s3, 256 }
 0x11c   : > { %p619_p4 = scmp.ne.s32.totalorder %s841_s28, %s618_s5  ;;  %p623_p1 = scmp.lt.u32.totalorder %s841_s28, %s893_s3 }
 0x11d   : > { %p624_p2 = scmp.lt.u32.totalorder %s622_s6, %s618_s5  ;;  %p626_p8 = scmp.lt.u32.totalorder %s618_s5, %s841_s28 }
 0x11e   : > { %p620_p10 = pnand %p619_p4, %p902_p9 }
 0x11f   : > { %p625_p5 = por %p624_p2, %p623_p1 }
 0x120   : > { %p621_p12 = pneg %p620_p10 }
 0x121   : > { %p627_p11 = por %p626_p8, %p625_p5 }
 0x123   : > { %p628_p0 = pnand %p627_p11, %p621_p12 }
 0x125   : > { %631 = shalt.err (!%p628_p0)
}
 0x126   : > { %510 = dma.vmem_to_hbm [thread:$0]  (%p902_p9), %s843_s21, 128, %s841_s28, %s349_s29  }
 0x127 PF: > { %s379_s10 = sand.u32 1, %s666_s12   ;;  %p903_p7 = scmp.ne.s32.totalorder %s898_s27, 0 }
 0x128   : > { %p904_p13 = scmp.ge.s32.totalorder %s686_s17, 2  ;;  %s380_s24 = scalar_lea.sflag [#allocation4], %s379_s10 }
 0x12a   : > { %p517_p3 = pnand %p904_p13, %p903_p7 }
 0x12c   : > { %661 = dma.done.wait (!%p517_p3), %s380_s24, 128  }
 0x12d   : > { %663 = vsyncadd (!%p517_p3), %s380_s24, 4294967168  ;;  %s19_s17 = sadd.s32 1, %s686_s17   ;;  %s905_s12 = smov %s670_s13 }
 0x12e   : > { %p16_p6 = scmp.ge.s32.totalorder %s19_s17, 4   ;;  %s906_s13 = smov %s674_s14 }
 0x12f   : > { %s907_s14 = smov %s768_s26  ;;  %s908_s15 = smov %s682_s16 }
 0x130   : > { %s909_s16 = smov %s911_s20  ;;  %18 = sbr.rel (!%p16_p6) target bundleno = 6 (0x6), region = 83 }
 0x137   :  { %385 = vsyncpa [#allocation3], 1 }
 0x138   :  { %387 = vsyncpa [#allocation3 + $0x1], 1 }
 0x139   :  { %388 = vsyncpa [#allocation4], 1 }
 0x13a   :  { %390 = vsyncpa [#allocation4 + $0x1], 1 }

</bundles_post_ra>
